<compile_context>
chip_gen: v6e
topology: v6e:2x2x1
jax: 0.10.0
libtpu: 0.0.40
codegen_flags: <defaults>
</compile_context>

<pallas_src>
import functools

import jax
import jax.numpy as jnp
from jax.experimental import pallas as pl
from jax.experimental.pallas import tpu as pltpu

_HIDDEN = 128
_NEG_INF = -1e30


def _mlp_softmax_kernel(x_ref, slab_ref, w2_ref, w3_ref, out_ref, *, obs_dim):
    # x_ref    : [TB, obs_dim]        f32   (batch tile)
    # slab_ref : [obs_dim + 3, 128]   f32   rows: w1[k,:], b1, b2, b3(padded -1e30)
    # w2_ref   : [128, 128]           bf16  (resident)
    # w3_ref   : [128, 128]           f32   (resident, zero-padded columns)
    # out_ref  : [TB, 128]            f32   (lane-dense; cols >= action_dim are 0)
    x = x_ref[...]
    slab = slab_ref[...]

    b1 = slab[obs_dim:obs_dim + 1, :]            # [1, 128]
    b2 = slab[obs_dim + 1:obs_dim + 2, :]        # [1, 128]
    b3 = slab[obs_dim + 2:obs_dim + 3, :]        # [1, 128], padded lanes = -1e30

    # affine1 + ReLU: obs_dim broadcast FMAs on the VPU (K is tiny; keeps the
    # MXU free).  Tree-summed so the dependency chain is log2(obs_dim) deep.
    # TODO(synk): if obs_dim ever grows beyond ~8, switch to a zero-padded MXU pass.
    terms = [x[:, k:k + 1] * slab[k:k + 1, :] for k in range(obs_dim)]
    while len(terms) > 1:
        nxt = [terms[i] + terms[i + 1] for i in range(0, len(terms) - 1, 2)]
        if len(terms) % 2:
            nxt.append(terms[-1])
        terms = nxt
    h1 = jnp.maximum(terms[0] + b1, 0.0)                         # [TB, 128] f32

    # middle + ReLU: bf16 inputs, f32 accumulation on the MXU.
    h2 = jnp.dot(h1.astype(jnp.bfloat16), w2_ref[...],
                 preferred_element_type=jnp.float32)
    h2 = jnp.maximum(h2 + b2, 0.0)                               # [TB, 128] f32

    # affine2 logits: lane-dense N=128 MXU matmul (zero-padded w3 columns;
    # padded b3 lanes = -1e30 so they contribute exp() = 0 below).
    logits = jnp.dot(h2, w3_ref[...], preferred_element_type=jnp.float32) + b3

    # numerically stable softmax over the (lane-padded) action axis, all f32.
    m = jnp.max(logits, axis=1, keepdims=True)
    e = jnp.exp(logits - m)
    denom = jnp.sum(e, axis=1, keepdims=True)
    # EUP approx reciprocal + one Newton-Raphson step -> exact-to-f32 softmax.
    r = pl.reciprocal(denom, approx=True)
    r = r * (2.0 - denom * r)
    out_ref[...] = (e * r).astype(out_ref.dtype)


def _round_up(n, m):
    return ((n + m - 1) // m) * m


def pack_params(w1, b1, w2, b2, w3, b3):
    """One-time parameter packing (call at load time, NOT per forward).

    Weights are stored [in_features, out_features] (transpose of PyTorch's
    Linear layout), biases [1, out_features].
    """
    f32 = jnp.float32
    obs_dim, hidden = w1.shape
    action_dim = w3.shape[1]
    assert hidden == _HIDDEN and w2.shape == (_HIDDEN, _HIDDEN)
    assert action_dim <= _HIDDEN

    b3_pad = jnp.full((1, hidden), _NEG_INF, f32)
    b3_pad = b3_pad.at[:, :action_dim].set(jnp.asarray(b3, f32).reshape(1, action_dim))
    slab = jnp.concatenate(
        [jnp.asarray(w1, f32),                         # [obs_dim, 128]
         jnp.asarray(b1, f32).reshape(1, hidden),      # [1, 128]
         jnp.asarray(b2, f32).reshape(1, hidden),      # [1, 128]
         b3_pad],                                      # [1, 128]
        axis=0)
    w2_bf16 = jnp.asarray(w2, jnp.bfloat16)            # [128, 128]
    w3_pad = jnp.zeros((hidden, hidden), f32).at[:, :action_dim].set(
        jnp.asarray(w3, f32))                          # [128, 128]
    return slab, w2_bf16, w3_pad, int(action_dim)


@functools.partial(jax.jit, static_argnames=("action_dim", "tb"))
def forward_packed(x, slab, w2_bf16, w3_pad, *, action_dim, tb=128):
    """x [B, obs_dim] f32 -> action probs [B, action_dim] f32."""
    B, obs_dim = x.shape
    hidden = _HIDDEN

    # Clamp the tile to the 8-aligned batch (no wasted padding rows for tiny
    # batches); for B >= 256 guarantee >= 2 grid steps so v7x's two
    # TensorCores both get a share of the "parallel" batch axis.
    B8 = _round_up(B, 8)
    tb_eff = min(tb, B8)
    if B8 >= 256 and tb_eff >= B8:
        tb_eff = _round_up(pl.cdiv(B8, 2), 8)
    n_tiles = pl.cdiv(B8, tb_eff)
    Bp = n_tiles * tb_eff
    if Bp != B:
        x = jnp.pad(x, ((0, Bp - B), (0, 0)))

    flops = 2 * Bp * (obs_dim * hidden + hidden * hidden + hidden * hidden)
    cost = pl.CostEstimate(
        flops=flops,
        transcendentals=Bp * hidden,
        bytes_accessed=(Bp * obs_dim * 4 + Bp * hidden * 4
                        + slab.size * 4 + w2_bf16.size * 2 + w3_pad.size * 4))

    kernel = functools.partial(_mlp_softmax_kernel, obs_dim=obs_dim)
    out = pl.pallas_call(
        kernel,
        out_shape=jax.ShapeDtypeStruct((Bp, hidden), jnp.float32),
        grid=(n_tiles,),
        in_specs=[
            pl.BlockSpec((tb_eff, obs_dim), lambda i: (i, 0)),     # x batch tile
            pl.BlockSpec(slab.shape, lambda i: (0, 0)),            # resident slab
            pl.BlockSpec((hidden, hidden), lambda i: (0, 0)),      # resident w2
            pl.BlockSpec((hidden, hidden), lambda i: (0, 0)),      # resident w3
        ],
        out_specs=pl.BlockSpec((tb_eff, hidden), lambda i: (i, 0)),
        compiler_params=pltpu.CompilerParams(
            dimension_semantics=("parallel",)),
        cost_estimate=cost,
    )(x, slab, w2_bf16, w3_pad)

    # Drop batch padding and the zero lane-padding of the action axis
    # (fuses with the kernel call under jit).
    return out[:B, :action_dim]


def cart_entropy_policy_forward(x, w1, b1, w2, b2, w3, b3, *, tb=128):
    """Convenience wrapper: packs params then calls the jitted forward.

    For repeated inference, call pack_params() once and reuse forward_packed.
    """
    slab, w2_bf16, w3_pad, action_dim = pack_params(w1, b1, w2, b2, w3, b3)
    return forward_packed(x, slab, w2_bf16, w3_pad, action_dim=action_dim, tb=tb)


def _xavier_uniform(key, fan_in, fan_out):
    # matches torch.nn.init.xavier_uniform_ (gain=1.0); stored as [in, out]
    bound = (6.0 / (fan_in + fan_out)) ** 0.5
    return jax.random.uniform(key, (fan_in, fan_out), jnp.float32, -bound, bound)


def _linear_bias(key, fan_in, fan_out):
    # matches PyTorch nn.Linear default bias init: U(-1/sqrt(fan_in), 1/sqrt(fan_in))
    bound = 1.0 / (fan_in ** 0.5)
    return jax.random.uniform(key, (1, fan_out), jnp.float32, -bound, bound)


if __name__ == "__main__":
    # Pendulum-style obs_dim=3, action_dim=3, hidden=128, batch=8.
    obs_dim, hidden, action_dim, batch = 3, _HIDDEN, 3, 8

    key = jax.random.PRNGKey(0)
    kx, k1, k2, k3, kb1, kb2, kb3 = jax.random.split(key, 7)

    x = jax.random.normal(kx, (batch, obs_dim), jnp.float32)

    w1 = _xavier_uniform(k1, obs_dim, hidden)
    b1 = _linear_bias(kb1, obs_dim, hidden)
    w2 = _xavier_uniform(k2, hidden, hidden)
    b2 = _linear_bias(kb2, hidden, hidden)
    w3 = _xavier_uniform(k3, hidden, action_dim)
    b3 = _linear_bias(kb3, hidden, action_dim)

    # Recommended usage: pack once, then call the jitted forward repeatedly.
    slab, w2_bf16, w3_pad, adim = pack_params(w1, b1, w2, b2, w3, b3)
    probs = forward_packed(x, slab, w2_bf16, w3_pad, action_dim=adim)
    probs = jax.block_until_ready(probs)
    assert probs.shape == (batch, action_dim)

    # Reference matched to the kernel's precision (bf16 inputs / f32 acc for
    # the middle matmul, everything else f32).
    h1 = jnp.maximum(x @ w1 + b1, 0.0)
    h2m = jnp.maximum(
        jnp.dot(h1.astype(jnp.bfloat16), w2.astype(jnp.bfloat16),
                preferred_element_type=jnp.float32) + b2, 0.0)
    ref_matched = jax.nn.softmax(h2m @ w3 + b3, axis=1)

    # Full-f32 reference (original PyTorch semantics).
    h2f = jnp.maximum(h1 @ w2 + b2, 0.0)
    ref_f32 = jax.nn.softmax(h2f @ w3 + b3, axis=1)

    assert jnp.allclose(probs, ref_matched, atol=5e-3, rtol=5e-3)
    assert jnp.allclose(probs, ref_f32, atol=3e-2, rtol=3e-2)
    assert jnp.allclose(jnp.sum(probs, axis=1), 1.0, atol=1e-5)

    print("KERNEL_OK")
</pallas_src>

<mosaic_0001>
module attributes {stable_mosaic.version = 11 : i64} {
  func.func @_mlp_softmax_kernel(%arg0: i32, %arg1: memref<8x3xf32, #tpu.memory_space<vmem>>, %arg2: memref<6x128xf32, #tpu.memory_space<vmem>>, %arg3: memref<128x128xbf16, #tpu.memory_space<vmem>>, %arg4: memref<128x128xf32, #tpu.memory_space<vmem>>, %arg5: memref<8x128xf32, #tpu.memory_space<vmem>>) attributes {dimension_semantics = [#tpu.dimension_semantics<parallel>], iteration_bounds = array<i64: 1>, scalar_prefetch = 0 : i64, scratch_operands = 0 : i64, tpu.core_type = #tpu.core_type<tc>, window_params = [{transform_indices = @transform_0, window_bounds = array<i64: 8, 3>}, {pipeline_mode = #tpu.pipeline_mode<synchronous>, transform_indices = @transform_1, window_bounds = array<i64: 6, 128>}, {pipeline_mode = #tpu.pipeline_mode<synchronous>, transform_indices = @transform_2, window_bounds = array<i64: 128, 128>}, {pipeline_mode = #tpu.pipeline_mode<synchronous>, transform_indices = @transform_3, window_bounds = array<i64: 128, 128>}, {transform_indices = @transform_4, window_bounds = array<i64: 8, 128>}]} {
    %c0 = arith.constant 0 : index
    %c0_0 = arith.constant 0 : index
    %0 = vector.load %arg1[%c0, %c0_0] : memref<8x3xf32, #tpu.memory_space<vmem>>, vector<8x3xf32>
    %c0_1 = arith.constant 0 : index
    %c0_2 = arith.constant 0 : index
    %1 = vector.load %arg2[%c0_1, %c0_2] : memref<6x128xf32, #tpu.memory_space<vmem>>, vector<6x128xf32>
    %2 = vector.extract_strided_slice %1 {offsets = [3, 0], sizes = [1, 128], strides = [1, 1]} : vector<6x128xf32> to vector<1x128xf32>
    %3 = vector.extract_strided_slice %1 {offsets = [4, 0], sizes = [1, 128], strides = [1, 1]} : vector<6x128xf32> to vector<1x128xf32>
    %4 = vector.extract_strided_slice %1 {offsets = [5, 0], sizes = [1, 128], strides = [1, 1]} : vector<6x128xf32> to vector<1x128xf32>
    %5 = vector.extract_strided_slice %0 {offsets = [0, 0], sizes = [8, 1], strides = [1, 1]} : vector<8x3xf32> to vector<8x1xf32>
    %6 = vector.extract_strided_slice %1 {offsets = [0, 0], sizes = [1, 128], strides = [1, 1]} : vector<6x128xf32> to vector<1x128xf32>
    %7 = vector.broadcast %5 : vector<8x1xf32> to vector<8x128xf32>
    %8 = vector.broadcast %6 : vector<1x128xf32> to vector<8x128xf32>
    %9 = arith.mulf %7, %8 : vector<8x128xf32>
    %10 = vector.extract_strided_slice %0 {offsets = [0, 1], sizes = [8, 1], strides = [1, 1]} : vector<8x3xf32> to vector<8x1xf32>
    %11 = vector.extract_strided_slice %1 {offsets = [1, 0], sizes = [1, 128], strides = [1, 1]} : vector<6x128xf32> to vector<1x128xf32>
    %12 = vector.broadcast %10 : vector<8x1xf32> to vector<8x128xf32>
    %13 = vector.broadcast %11 : vector<1x128xf32> to vector<8x128xf32>
    %14 = arith.mulf %12, %13 : vector<8x128xf32>
    %15 = vector.extract_strided_slice %0 {offsets = [0, 2], sizes = [8, 1], strides = [1, 1]} : vector<8x3xf32> to vector<8x1xf32>
    %16 = vector.extract_strided_slice %1 {offsets = [2, 0], sizes = [1, 128], strides = [1, 1]} : vector<6x128xf32> to vector<1x128xf32>
    %17 = vector.broadcast %15 : vector<8x1xf32> to vector<8x128xf32>
    %18 = vector.broadcast %16 : vector<1x128xf32> to vector<8x128xf32>
    %19 = arith.mulf %17, %18 : vector<8x128xf32>
    %20 = arith.addf %9, %14 : vector<8x128xf32>
    %21 = arith.addf %20, %19 : vector<8x128xf32>
    %22 = vector.broadcast %2 : vector<1x128xf32> to vector<8x128xf32>
    %23 = arith.addf %21, %22 : vector<8x128xf32>
    %cst = arith.constant 0.000000e+00 : f32
    %24 = vector.broadcast %cst : f32 to vector<8x128xf32>
    %25 = arith.maximumf %23, %24 : vector<8x128xf32>
    %26 = arith.truncf %25 : vector<8x128xf32> to vector<8x128xbf16>
    %c0_3 = arith.constant 0 : index
    %c0_4 = arith.constant 0 : index
    %27 = vector.load %arg3[%c0_3, %c0_4] : memref<128x128xbf16, #tpu.memory_space<vmem>>, vector<128x128xbf16>
    %cst_5 = arith.constant dense<0.000000e+00> : vector<8x128xf32>
    %28 = tpu.matmul %26, %27, %cst_5 {dimension_numbers = #tpu.dot_dimension_numbers<[1], [0], [0], [1], [0, 0, 1, 1], [], []>} : vector<8x128xbf16>, vector<128x128xbf16>, vector<8x128xf32> -> vector<8x128xf32>
    %29 = vector.broadcast %3 : vector<1x128xf32> to vector<8x128xf32>
    %30 = arith.addf %28, %29 : vector<8x128xf32>
    %cst_6 = arith.constant 0.000000e+00 : f32
    %31 = vector.broadcast %cst_6 : f32 to vector<8x128xf32>
    %32 = arith.maximumf %30, %31 : vector<8x128xf32>
    %c0_7 = arith.constant 0 : index
    %c0_8 = arith.constant 0 : index
    %33 = vector.load %arg4[%c0_7, %c0_8] : memref<128x128xf32, #tpu.memory_space<vmem>>, vector<128x128xf32>
    %cst_9 = arith.constant dense<0.000000e+00> : vector<8x128xf32>
    %34 = tpu.matmul %32, %33, %cst_9 {dimension_numbers = #tpu.dot_dimension_numbers<[1], [0], [0], [1], [0, 0, 1, 1], [], []>} : vector<8x128xf32>, vector<128x128xf32>, vector<8x128xf32> -> vector<8x128xf32>
    %35 = vector.broadcast %4 : vector<1x128xf32> to vector<8x128xf32>
    %36 = arith.addf %34, %35 : vector<8x128xf32>
    %cst_10 = arith.constant dense<0xFF800000> : vector<8xf32>
    %37 = vector.multi_reduction <maximumf>, %36, %cst_10 [1] : vector<8x128xf32> to vector<8xf32>
    %38 = vector.shape_cast %37 : vector<8xf32> to vector<8x1xf32>
    %39 = vector.broadcast %38 : vector<8x1xf32> to vector<8x128xf32>
    %40 = arith.subf %36, %39 : vector<8x128xf32>
    %41 = math.exp %40 : vector<8x128xf32>
    %cst_11 = arith.constant dense<0.000000e+00> : vector<8xf32>
    %42 = vector.multi_reduction <add>, %41, %cst_11 [1] : vector<8x128xf32> to vector<8xf32>
    %43 = vector.shape_cast %42 : vector<8xf32> to vector<8x1xf32>
    %44 = tpu.reciprocal %43 {approx = true} : vector<8x1xf32> -> vector<8x1xf32>
    %45 = arith.mulf %43, %44 : vector<8x1xf32>
    %cst_12 = arith.constant 2.000000e+00 : f32
    %46 = vector.broadcast %cst_12 : f32 to vector<8x1xf32>
    %47 = arith.subf %46, %45 : vector<8x1xf32>
    %48 = arith.mulf %44, %47 : vector<8x1xf32>
    %49 = vector.broadcast %48 : vector<8x1xf32> to vector<8x128xf32>
    %50 = arith.mulf %41, %49 : vector<8x128xf32>
    %c0_13 = arith.constant 0 : index
    %c0_14 = arith.constant 0 : index
    %51 = vector.load %arg5[%c0_13, %c0_14] : memref<8x128xf32, #tpu.memory_space<vmem>>, vector<8x128xf32>
    tpu.vector_store %arg5[%c0_13, %c0_14], %50 {strides = array<i32>} : memref<8x128xf32, #tpu.memory_space<vmem>>, vector<8x128xf32>,
    return
  }
  func.func @transform_0(%arg0: i32) -> (i32, i32) {
    %c0_i32 = arith.constant 0 : i32
    %c0_i32_0 = arith.constant 0 : i32
    return %arg0, %c0_i32 : i32, i32
  }
  func.func @transform_1(%arg0: i32) -> (i32, i32) {
    %c0_i32 = arith.constant 0 : i32
    %c0_i32_0 = arith.constant 0 : i32
    %c0_i32_1 = arith.constant 0 : i32
    return %c0_i32, %c0_i32_0 : i32, i32
  }
  func.func @transform_2(%arg0: i32) -> (i32, i32) {
    %c0_i32 = arith.constant 0 : i32
    %c0_i32_0 = arith.constant 0 : i32
    %c0_i32_1 = arith.constant 0 : i32
    return %c0_i32, %c0_i32_0 : i32, i32
  }
  func.func @transform_3(%arg0: i32) -> (i32, i32) {
    %c0_i32 = arith.constant 0 : i32
    %c0_i32_0 = arith.constant 0 : i32
    %c0_i32_1 = arith.constant 0 : i32
    return %c0_i32, %c0_i32_0 : i32, i32
  }
  func.func @transform_4(%arg0: i32) -> (i32, i32) {
    %c0_i32 = arith.constant 0 : i32
    %c0_i32_0 = arith.constant 0 : i32
    return %arg0, %c0_i32 : i32, i32
  }
}

</mosaic_0001>

<bundles_post_ra>
// kernel: forward_packed.1
= control target key start
LH: loop header
LB: loop body
LE: loop exit
PB: predicated region body
PF: predicated region fallthrough
CT: control target
= control target key end

     0   :  { %9 = vsyncpa [#allocation3], 0  ;;  %s540_s0 = inlined_call_operand.vmem [shape: f32[8,3], index: 0, kind: input, shape index: {}]   ;;  %s541_s1 = inlined_call_operand.vmem [shape: f32[6,128], index: 1, kind: input, shape index: {}]   ;;  %s542_s2 = inlined_call_operand.hbm [shape: bf16[128,128], index: 2, kind: input, shape index: {}]   ;;  %s543_s3 = inlined_call_operand.hbm [shape: f32[128,128], index: 3, kind: input, shape index: {}]   ;;  %s544_s4 = inlined_call_operand.vmem [shape: f32[8,128], index: 4, kind: output, shape index: {}]  }
   0x1   :  { %10 = vsyncpa [#allocation5], 0  ;;  %s463_s15 = smov [#allocation2]  }
   0x2   :  { %s20_s16 = sshll.u32 %s463_s15, 4  ;;  %s21_s16 = int_to_ptr.vmem [resolvable:$true] %s20_s16 }
   0x3   :  { %s427_s17 = scalar_lea.vmem %s21_s16, 1024  ;;  %p432_p1 = scmp.lt.s32.totalorder %s21_s16, %s21_s16 }
   0x4   :  { %p428_p0 = scmp.ne.s32.totalorder %s21_s16, %s427_s17  ;;  %p433_p2 = scmp.lt.s32.totalorder %s427_s17, %s427_s17 }
   0x6   :  { %p434_p3 = por %p433_p2, %p432_p1 }
   0x8   :  { %p435_p4 = pnand %p434_p3, %p428_p0 }
   0xa   :  { %438 = shalt.err (!%p435_p4)
}
   0xb   :  { %s464_s18 = smov 64   ;;  %s465_s19 = smov 4  }
   0xc   :  { %26 = dma.hbm_to_vmem [thread:$0]  %s542_s2, 1024, %s21_s16, [#allocation3], %s464_s18, %s464_s18, %s465_s19  }
   0xd   :  { %s466_s22 = smov [#allocation4]  }
   0xe   :  { %s32_s23 = sshll.u32 %s466_s22, 4  ;;  %s33_s23 = int_to_ptr.vmem [resolvable:$true] %s32_s23 }
   0xf   :  { %s447_s24 = scalar_lea.vmem %s33_s23, 2048  ;;  %p452_p6 = scmp.lt.s32.totalorder %s33_s23, %s33_s23 }
  0x10   :  { %p448_p5 = scmp.ne.s32.totalorder %s33_s23, %s447_s24  ;;  %p453_p7 = scmp.lt.s32.totalorder %s447_s24, %s447_s24 }
  0x12   :  { %p454_p8 = por %p453_p7, %p452_p6 }
  0x14   :  { %p455_p9 = pnand %p454_p8, %p448_p5 }
  0x16   :  { %458 = shalt.err (!%p455_p9)
}
  0x17   :  { %s467_s25 = smov 128   ;;  %s468_s26 = smov 8  }
  0x18   :  { %38 = dma.hbm_to_vmem [thread:$0]  %s543_s3, 2048, %s33_s23, [#allocation5], %s467_s25, %s467_s25, %s468_s26  }
  0x19   :  { %459 = dma.done.wait [#allocation3], 1024  }
  0x1a   :  { %460 = vsyncadd [#allocation3], 4294966272 }
  0x1b   :  { %461 = dma.done.wait [#allocation5], 2048  }
  0x1c   :  { %462 = vsyncadd [#allocation5], 4294965248  ;;  %v469_v0 = vmov 0   ;;  %v470_v1 = vmov 2   ;;  %v471_v2 = vmov 0.0   ;;  %v46_v3 = vld [vmem:[%s540_s0] sm:$0xff]  ;;  %v53_v26 = vlaneseq }
  0x1d   :  { %403 = vset.pattern.permute.xlu0 %v469_v0  ;;  %405 = vset.pattern.permute.xlu1 %v470_v1  ;;  %v407_v4 = vld [vmem:[#allocation2 + $0x38] sm:$0xff]   ;;  %v408_v5 = vld [vmem:[#allocation2 + $0x30] sm:$0xff]   ;;  %v472_v6 = vmov 1   ;;  %v409_v7 = vld [vmem:[#allocation2 + $0x28] sm:$0xff]   ;;  %vm473_vm0 = vmmov 0  }
  0x1e   :  { %337 = vmatprep.subr.bf16.mxu0 %v471_v2  ;;  %357 = vmatprep.subr.mxu1 %v471_v2  ;;  %v410_v8 = vld [vmem:[#allocation2 + $0x20] sm:$0xff]   ;;  %v209_v9 = vld [vmem:[#allocation4 + $0x78] sm:$0xff]  ;;  %v208_v10 = vld [vmem:[#allocation4 + $0x70] sm:$0xff]  ;;  %v54_v27 = vshrl.u32 %v53_v26, 7 }
  0x1f   :  { %50 = vperm.xlu0 %403, %v46_v3   ;;  %68 = vperm.xlu1 %405, %v46_v3   ;;  %v411_v11 = vld [vmem:[#allocation2 + $0x18] sm:$0xff]   ;;  %v207_v12 = vld [vmem:[#allocation4 + $0x68] sm:$0xff]  ;;  %v206_v13 = vld [vmem:[#allocation4 + $0x60] sm:$0xff] }
  0x20   :  { %338 = vmatpush3.bf16.msra.mxu0 %v407_v4  ;;  %353 = vmatprep.mubr.msk.bf16.mxu0 %vm473_vm0, %v471_v2  ;;  %v412_v14 = vld [vmem:[#allocation2 + $0x10] sm:$0xff]   ;;  %v205_v15 = vld [vmem:[#allocation4 + $0x58] sm:$0xff]  ;;  %v413_v17 = vld [vmem:[#allocation2 + $0x8] sm:$0xff]   ;;  %v55_v28 = vsub.s32 0, %v54_v27  ;;  %v64_v29 = vsub.s32 1, %v54_v27  ;;  %v73_v30 = vsub.s32 2, %v54_v27 }
  0x21   :  { %339 = vmatprep.subr.bf16.mxu0 %v471_v2  ;;  %389 = vmatprep.mubr.msk.f32.mxu1 %vm473_vm0, %v471_v2  ;;  %v204_v16 = vld [vmem:[#allocation4 + $0x50] sm:$0xff]  ;;  %v203_v18 = vld [vmem:[#allocation4 + $0x48] sm:$0xff]  ;;  %v202_v19 = vld [vmem:[#allocation4 + $0x40] sm:$0xff]  ;;  %v80_v37 = vsub.s32 3, %v54_v27  ;;  %v103_v51 = vsub.s32 4, %v54_v27  ;;  %v212_v59 = vsub.s32 5, %v54_v27 }
  0x22   :  { %358 = vmatpush3.msra.mxu1 %v209_v9  ;;  %v414_v20 = vld [vmem:[#allocation2] sm:$0xff]   ;;  %v201_v21 = vld [vmem:[#allocation4 + $0x38] sm:$0xff]  ;;  %v200_v22 = vld [vmem:[#allocation4 + $0x30] sm:$0xff] }
  0x23   :  { %404 = vset.pattern.permute.xlu0 %v472_v6  ;;  %359 = vmatprep.subr.mxu1 %v471_v2  ;;  %v199_v23 = vld [vmem:[#allocation4 + $0x28] sm:$0xff]  ;;  %v198_v24 = vld [vmem:[#allocation4 + $0x20] sm:$0xff]  ;;  %v197_v25 = vld [vmem:[#allocation4 + $0x18] sm:$0xff] }
  0x24   :  { %59 = vperm.xlu0 %404, %v46_v3   ;;  %340 = vmatpush3.bf16.msra.mxu0 %v408_v5  ;;  %v47_v31 = vld [vmem:[%s541_s1] sm:$0x3f]  ;;  %v196_v48 = vld [vmem:[#allocation4 + $0x10] sm:$0xff]  ;;  %v195_v49 = vld [vmem:[#allocation4 + $0x8] sm:$0xff] }
  0x25   :  { %341 = vmatprep.subr.bf16.mxu0 %v471_v2  ;;  %360 = vmatpush3.msra.mxu1 %v208_v10  ;;  %v56_v33 = vrot.slane %v47_v31, %v55_v28  ;;  %v65_v34 = vrot.slane %v47_v31, %v64_v29  ;;  %v74_v35 = vrot.slane %v47_v31, %v73_v30  ;;  %v194_v50 = vld [vmem:[#allocation4] sm:$0xff] }
  0x26   :  { %361 = vmatprep.subr.mxu1 %v471_v2  ;;  %v81_v43 = vrot.slane %v47_v31, %v80_v37  ;;  %v104_v52 = vrot.slane %v47_v31, %v103_v51  ;;  %v213_v60 = vrot.slane %v47_v31, %v212_v59 }
  0x27   :  { %362 = vmatpush3.msra.mxu1 %v207_v12 }
  0x28   :  { %406 = vset.pattern.permute.xlu0 %v470_v1  ;;  %342 = vmatpush3.bf16.msra.mxu0 %v409_v7 }
  0x29   :  { %343 = vmatprep.subr.bf16.mxu0 %v471_v2  ;;  %363 = vmatprep.subr.mxu1 %v471_v2 }
  0x2a   :  { %364 = vmatpush3.msra.mxu1 %v206_v13 }
  0x2b   :  { %365 = vmatprep.subr.mxu1 %v471_v2 }
  0x2c   :  { %344 = vmatpush3.bf16.msra.mxu0 %v410_v8  ;;  %366 = vmatpush3.msra.mxu1 %v205_v15 }
  0x2d   :  { %345 = vmatprep.subr.bf16.mxu0 %v471_v2  ;;  %367 = vmatprep.subr.mxu1 %v471_v2 }
  0x2e   :  { %368 = vmatpush3.msra.mxu1 %v204_v16 }
  0x2f   :  { %369 = vmatprep.subr.mxu1 %v471_v2 }
  0x30   :  { %346 = vmatpush3.bf16.msra.mxu0 %v411_v11  ;;  %370 = vmatpush3.msra.mxu1 %v203_v18 }
  0x31   :  { %347 = vmatprep.subr.bf16.mxu0 %v471_v2  ;;  %371 = vmatprep.subr.mxu1 %v471_v2 }
  0x32   :  { %372 = vmatpush3.msra.mxu1 %v202_v19 }
  0x33   :  { %373 = vmatprep.subr.mxu1 %v471_v2 }
  0x34   :  { %348 = vmatpush3.bf16.msra.mxu0 %v412_v14  ;;  %374 = vmatpush3.msra.mxu1 %v201_v21 }
  0x35   :  { %349 = vmatprep.subr.bf16.mxu0 %v471_v2  ;;  %375 = vmatprep.subr.mxu1 %v471_v2 }
  0x36   :  { %376 = vmatpush3.msra.mxu1 %v200_v22 }
  0x37   :  { %377 = vmatprep.subr.mxu1 %v471_v2 }
  0x38   :  { %350 = vmatpush3.bf16.msra.mxu0 %v413_v17  ;;  %378 = vmatpush3.msra.mxu1 %v199_v23 }
  0x39   :  { %351 = vmatprep.subr.bf16.mxu0 %v471_v2  ;;  %379 = vmatprep.subr.mxu1 %v471_v2 }
  0x3a   :  { %380 = vmatpush3.msra.mxu1 %v198_v24 }
  0x3b   :  { %381 = vmatprep.subr.mxu1 %v471_v2 }
  0x3c   :  { %352 = vmatpush3.bf16.msra.mxu0 %v414_v20  ;;  %382 = vmatpush3.msra.mxu1 %v197_v25 }
  0x3d   :  { %383 = vmatprep.subr.mxu1 %v471_v2 }
  0x3e   :  { %384 = vmatpush3.msra.mxu1 %v196_v48 }
  0x3f   :  { %385 = vmatprep.subr.mxu1 %v471_v2 }
  0x40   :  { %386 = vmatpush3.msra.mxu1 %v195_v49 }
  0x41   :  { %387 = vmatprep.subr.mxu1 %v471_v2 }
  0x42   :  { %388 = vmatpush3.msra.mxu1 %v194_v50 }
  0x9a   :  { %v51_v32 = vpop.permute.xlu0 %50  ;;  %v69_v36 = vpop.permute.xlu1 %68 }
  0x9b   :  { %v57_v39 = vmul.f32 %v56_v33, %v51_v32  ;;  %v75_v41 = vmul.f32 %v74_v35, %v69_v36 }
  0x9f   :  { %v60_v38 = vpop.permute.xlu0 %59 }
  0xa0   :  { %v66_v40 = vmul.f32 %v65_v34, %v60_v38 }
  0xa2   :  { %v76_v42 = vadd.f32 %v66_v40, %v57_v39 }
  0xa4   :  { %v77_v44 = vadd.f32 %v76_v42, %v75_v41 }
  0xa6   :  { %v82_v45 = vadd.f32 %v81_v43, %v77_v44 }
  0xa8   :  { %v83_v46 = vmax.f32 %v82_v45, 0.0 }
  0xaa   :  { %v84_v47 = vpack.c.bf16 %v83_v46, %v83_v46 }
  0xac   :  { %354 = vmatmul.mubr.bf16.vlgmr.msra.gmra.mxu0 %v84_v47 }
 0x16c   :  { %v187_v53 = vpop.f32.mrf.mxu0 }
 0x16d   :  { %v188_v54 = vadd.f32 %v187_v53, %v104_v52 }
 0x16e   :  { %v355_v55 = vpop.f32.mrf.mxu0 }
 0x16f   :  { %v193_v56 = vmax.f32 %v188_v54, 0.0 }
 0x170   :  { %v190_v57 = vpop.f32.mrf.mxu0 }
 0x171   :  { %390 = vmatmul.mubr.f32.vlgmr.msra.gmra.mxu1 %v193_v56 }
 0x172   :  { %v356_v58 = vpop.f32.mrf.mxu0 }
 0x231   :  { %v280_v61 = vpop.f32.mrf.mxu1 }
 0x232   :  { %v281_v62 = vadd.f32 %v280_v61, %v213_v60 }
 0x233   :  { %v391_v63 = vpop.f32.mrf.mxu1 }
 0x234   :  { %284 = vmax.xlane.f32.xlu1 %v281_v62 }
 0x2bd   :  { %v285_v0 = vpop.xlane.xlu1 %284 }
 0x2be   :  { %v286_v1 = vsub.f32 %v281_v62, %v285_v0 }
 0x2c0   :  { %v287_v2 = vmul.f32 1.442695, %v286_v1 }
 0x2c2   :  { %415 = vpow2.f32 %v287_v2 }
 0x2cf   :  { %v416_v3 = vpop.eup %415 }
 0x2d0   :  { %289 = vadd.xlane.f32.xlu0 %v416_v3 }
 0x359   :  { %v290_v4 = vpop.xlane.xlu0 %289 }
 0x35a   :  { %417 = vrcp.f32 %v290_v4 }
 0x367   :  { %v418_v5 = vpop.eup %417 }
 0x368   :  { %v292_v6 = vmul.f32 %v418_v5, %v290_v4 }
 0x36a   :  { %v293_v7 = vsub.f32 2.0, %v292_v6 }
 0x36c   :  { %v294_v8 = vmul.f32 %v418_v5, %v293_v7 }
 0x36e   :  { %v295_v9 = vmul.f32 %v416_v3, %v294_v8 }
 0x370   :  { %296 = vst [vmem:[%s544_s4] sm:$0xff] %v295_v9 }
 0x371   :  { %301 = vsyncpa [#allocation3], 1 }
 0x372   :  { %302 = vsyncpa [#allocation5], 1 }

</bundles_post_ra>
